<compile_context>
chip_gen: v6e
topology: v6e:2x2x1
jax: 0.10.0
libtpu: 0.0.40
codegen_flags: <defaults>
</compile_context>

<pallas_src>
import functools

import jax
import jax.numpy as jnp
from jax import lax
from jax.experimental import pallas as pl
from jax.experimental.pallas import tpu as pltpu


def _addnorm_kernel(*refs, d_true: int, eps: float, has_mask: bool):
    if has_mask:
        x_ref, x1_ref, m_ref, gamma_ref, beta_ref, o_ref = refs
    else:
        x_ref, x1_ref, gamma_ref, beta_ref, o_ref = refs
        m_ref = None

    x = x_ref[...].astype(jnp.float32)
    x1 = x1_ref[...].astype(jnp.float32)
    if m_ref is not None:
        # mask already holds 0 or 1/(1-p): dropout is a single multiply
        x1 = x1 * m_ref[...].astype(jnp.float32)

    h = x + x1
    d_pad = h.shape[-1]
    inv_d = jnp.float32(1.0 / d_true)

    mean = jnp.sum(h, axis=-1, keepdims=True) * inv_d          # padded lanes are 0
    diff = h - mean
    if d_pad != d_true:
        # zero the padded lanes so they do not pollute the variance
        col = lax.broadcasted_iota(jnp.int32, h.shape, h.ndim - 1)
        diff = jnp.where(col < d_true, diff, 0.0)
    var = jnp.sum(diff * diff, axis=-1, keepdims=True) * inv_d  # biased, like torch
    inv = 1.0 / jnp.sqrt(var + eps)

    y = diff * inv * gamma_ref[...].astype(jnp.float32) + beta_ref[...].astype(jnp.float32)
    o_ref[...] = y.astype(o_ref.dtype)


def _round_up(n: int, m: int) -> int:
    return ((n + m - 1) // m) * m


def _pad2(a, rows_pad: int, cols_pad: int):
    pr, pc = rows_pad - a.shape[0], cols_pad - a.shape[1]
    if pr == 0 and pc == 0:
        return a
    return jnp.pad(a, ((0, pr), (0, pc)))


def add_norm(x, x1, gamma, beta, *, p: float = 0.1, training: bool = False,
             rng_key=None, eps: float = 1e-12, tm: int | None = None):
    assert x.shape == x1.shape
    orig_shape = x.shape
    d = x.shape[-1]
    dtype = x.dtype
    x2 = x.reshape(-1, d)
    x12 = x1.reshape(-1, d)
    rows = x2.shape[0]

    # --- dropout mask generated host-side (portable; avoids pltpu.prng_* ) ---
    has_mask = bool(training) and p > 0.0
    mask2 = None
    if has_mask:
        if rng_key is None:
            rng_key = jax.random.PRNGKey(0)
        keep_prob = max(0.0, 1.0 - float(p))
        if keep_prob > 0.0:
            keep = jax.random.bernoulli(rng_key, keep_prob, (rows, d))
            mask2 = (keep.astype(jnp.float32) * (1.0 / keep_prob)).astype(dtype)
        else:  # p >= 1.0: drop everything (avoids the 1/(1-p) / uint32 overflow issue)
            mask2 = jnp.zeros((rows, d), dtype)

    # --- tiling: lane-dense last dim, VMEM-budgeted row tile -----------------
    itemsize = jnp.dtype(dtype).itemsize
    sub = max(8, 32 // itemsize)                  # 8 (f32), 16 (bf16), 32 (int8)
    d_pad = d if d % 128 == 0 else _round_up(d, 128)

    n_streams = 4 if has_mask else 3              # x, x1, (mask), out
    stream_budget = 16 * 1024 * 1024              # double-buffered I/O tiles
    bytes_per_row = 2 * n_streams * d_pad * itemsize
    tm_auto = max(1, stream_budget // bytes_per_row)
    tm_eff = tm_auto if tm is None else int(tm)
    tm_eff = max(sub, min(tm_eff, 1024))
    tm_eff = (tm_eff // sub) * sub
    tm_eff = min(tm_eff, _round_up(rows, sub))    # never bigger than (padded) rows
    rows_pad = _round_up(rows, tm_eff)

    # --- pad operands (rows + lanes) -----------------------------------------
    x_p = _pad2(x2, rows_pad, d_pad)
    x1_p = _pad2(x12, rows_pad, d_pad)
    g_p = _pad2(gamma.reshape(1, d), 1, d_pad)
    b_p = _pad2(beta.reshape(1, d), 1, d_pad)
    args = [x_p, x1_p]
    if has_mask:
        args.append(_pad2(mask2, rows_pad, d_pad))
    args += [g_p, b_p]

    block = pl.BlockSpec((tm_eff, d_pad), lambda i: (i, 0))
    vec = pl.BlockSpec((1, d_pad), lambda i: (0, 0))
    in_specs = [block, block] + ([block] if has_mask else []) + [vec, vec]

    kernel = functools.partial(_addnorm_kernel, d_true=d, eps=float(eps),
                               has_mask=has_mask)

    out = pl.pallas_call(
        kernel,
        out_shape=jax.ShapeDtypeStruct((rows_pad, d_pad), dtype),
        grid=(rows_pad // tm_eff,),
        in_specs=in_specs,
        out_specs=block,
        compiler_params=pltpu.CompilerParams(
            dimension_semantics=("parallel",),        # rows independent -> megacore OK
            vmem_limit_bytes=48 * 1024 * 1024,        # safe on v5e/v6e/v7x
        ),
    )(*args)

    out = out[:rows, :d]
    return out.reshape(orig_shape)


if __name__ == "__main__":
    batch, seq, d_model = 2, 8, 32
    key = jax.random.PRNGKey(0)
    kx, kx1, kd = jax.random.split(key, 3)
    x = jax.random.normal(kx, (batch, seq, d_model), dtype=jnp.float32)
    x1 = jax.random.normal(kx1, (batch, seq, d_model), dtype=jnp.float32)

    # nn.LayerNorm defaults: weight=1, bias=0
    gamma = jnp.ones((d_model,), dtype=jnp.float32)
    beta = jnp.zeros((d_model,), dtype=jnp.float32)

    # Eval mode (dropout is identity) — compare against pure-JAX reference.
    out_eval = jax.block_until_ready(add_norm(x, x1, gamma, beta, p=0.1, training=False))
    h = x + x1
    mean = jnp.mean(h, axis=-1, keepdims=True)
    var = jnp.mean((h - mean) ** 2, axis=-1, keepdims=True)
    ref = (h - mean) / jnp.sqrt(var + 1e-12) * gamma + beta
    assert jnp.allclose(out_eval, ref, atol=1e-4, rtol=1e-4), "eval-mode mismatch"

    # Training mode exercises the dropout-mask path.
    out_train = jax.block_until_ready(
        add_norm(x, x1, gamma, beta, p=0.1, training=True, rng_key=kd))
    assert out_train.shape == x.shape
    assert bool(jnp.all(jnp.isfinite(out_train)))

    print("KERNEL_OK")
</pallas_src>

<mosaic_0001>
module attributes {stable_mosaic.version = 11 : i64} {
  func.func @_addnorm_kernel(%arg0: i32, %arg1: memref<16x128xf32, #tpu.memory_space<vmem>>, %arg2: memref<16x128xf32, #tpu.memory_space<vmem>>, %arg3: memref<1x128xf32, #tpu.memory_space<vmem>>, %arg4: memref<1x128xf32, #tpu.memory_space<vmem>>, %arg5: memref<16x128xf32, #tpu.memory_space<vmem>>) attributes {dimension_semantics = [#tpu.dimension_semantics<parallel>], iteration_bounds = array<i64: 1>, scalar_prefetch = 0 : i64, scratch_operands = 0 : i64, tpu.core_type = #tpu.core_type<tc>, window_params = [{transform_indices = @transform_0, window_bounds = array<i64: 16, 128>}, {transform_indices = @transform_1, window_bounds = array<i64: 16, 128>}, {pipeline_mode = #tpu.pipeline_mode<synchronous>, transform_indices = @transform_2, window_bounds = array<i64: 1, 128>}, {pipeline_mode = #tpu.pipeline_mode<synchronous>, transform_indices = @transform_3, window_bounds = array<i64: 1, 128>}, {transform_indices = @transform_4, window_bounds = array<i64: 16, 128>}]} {
    %c0 = arith.constant 0 : index
    %c0_0 = arith.constant 0 : index
    %0 = vector.load %arg1[%c0, %c0_0] : memref<16x128xf32, #tpu.memory_space<vmem>>, vector<16x128xf32>
    %c0_1 = arith.constant 0 : index
    %c0_2 = arith.constant 0 : index
    %1 = vector.load %arg2[%c0_1, %c0_2] : memref<16x128xf32, #tpu.memory_space<vmem>>, vector<16x128xf32>
    %2 = arith.addf %0, %1 : vector<16x128xf32>
    %cst = arith.constant dense<0.000000e+00> : vector<16xf32>
    %3 = vector.multi_reduction <add>, %2, %cst [1] : vector<16x128xf32> to vector<16xf32>
    %4 = vector.shape_cast %3 : vector<16xf32> to vector<16x1xf32>
    %cst_3 = arith.constant 3.125000e-02 : f32
    %5 = vector.broadcast %cst_3 : f32 to vector<16x1xf32>
    %6 = arith.mulf %4, %5 : vector<16x1xf32>
    %7 = vector.broadcast %6 : vector<16x1xf32> to vector<16x128xf32>
    %8 = arith.subf %2, %7 : vector<16x128xf32>
    %9 = tpu.iota {dimensions = array<i32: 1>} : vector<16x128xi32>
    %c32_i32 = arith.constant 32 : i32
    %10 = vector.broadcast %c32_i32 : i32 to vector<16x128xi32>
    %11 = arith.cmpi slt, %9, %10 : vector<16x128xi32>
    %cst_4 = arith.constant 0.000000e+00 : f32
    %12 = vector.broadcast %cst_4 : f32 to vector<16x128xf32>
    %13 = arith.select %11, %8, %12 : vector<16x128xi1>, vector<16x128xf32>
    %14 = arith.mulf %13, %13 : vector<16x128xf32>
    %cst_5 = arith.constant dense<0.000000e+00> : vector<16xf32>
    %15 = vector.multi_reduction <add>, %14, %cst_5 [1] : vector<16x128xf32> to vector<16xf32>
    %16 = vector.shape_cast %15 : vector<16xf32> to vector<16x1xf32>
    %cst_6 = arith.constant 3.125000e-02 : f32
    %17 = vector.broadcast %cst_6 : f32 to vector<16x1xf32>
    %18 = arith.mulf %16, %17 : vector<16x1xf32>
    %cst_7 = arith.constant 9.99999996E-13 : f32
    %19 = vector.broadcast %cst_7 : f32 to vector<16x1xf32>
    %20 = arith.addf %18, %19 : vector<16x1xf32>
    %21 = math.sqrt %20 : vector<16x1xf32>
    %cst_8 = arith.constant 1.000000e+00 : f32
    %22 = vector.broadcast %cst_8 : f32 to vector<16x1xf32>
    %23 = arith.divf %22, %21 : vector<16x1xf32>
    %24 = vector.broadcast %23 : vector<16x1xf32> to vector<16x128xf32>
    %25 = arith.mulf %13, %24 : vector<16x128xf32>
    %c0_9 = arith.constant 0 : index
    %c0_10 = arith.constant 0 : index
    %26 = vector.load %arg3[%c0_9, %c0_10] : memref<1x128xf32, #tpu.memory_space<vmem>>, vector<1x128xf32>
    %27 = vector.broadcast %26 : vector<1x128xf32> to vector<16x128xf32>
    %28 = arith.mulf %25, %27 : vector<16x128xf32>
    %c0_11 = arith.constant 0 : index
    %c0_12 = arith.constant 0 : index
    %29 = vector.load %arg4[%c0_11, %c0_12] : memref<1x128xf32, #tpu.memory_space<vmem>>, vector<1x128xf32>
    %30 = vector.broadcast %29 : vector<1x128xf32> to vector<16x128xf32>
    %31 = arith.addf %28, %30 : vector<16x128xf32>
    %c0_13 = arith.constant 0 : index
    %c0_14 = arith.constant 0 : index
    %32 = vector.load %arg5[%c0_13, %c0_14] : memref<16x128xf32, #tpu.memory_space<vmem>>, vector<16x128xf32>
    tpu.vector_store %arg5[%c0_13, %c0_14], %31 {strides = array<i32>} : memref<16x128xf32, #tpu.memory_space<vmem>>, vector<16x128xf32>,
    return
  }
  func.func @transform_0(%arg0: i32) -> (i32, i32) {
    %c0_i32 = arith.constant 0 : i32
    %c0_i32_0 = arith.constant 0 : i32
    return %arg0, %c0_i32 : i32, i32
  }
  func.func @transform_1(%arg0: i32) -> (i32, i32) {
    %c0_i32 = arith.constant 0 : i32
    %c0_i32_0 = arith.constant 0 : i32
    return %arg0, %c0_i32 : i32, i32
  }
  func.func @transform_2(%arg0: i32) -> (i32, i32) {
    %c0_i32 = arith.constant 0 : i32
    %c0_i32_0 = arith.constant 0 : i32
    %c0_i32_1 = arith.constant 0 : i32
    return %c0_i32, %c0_i32_0 : i32, i32
  }
  func.func @transform_3(%arg0: i32) -> (i32, i32) {
    %c0_i32 = arith.constant 0 : i32
    %c0_i32_0 = arith.constant 0 : i32
    %c0_i32_1 = arith.constant 0 : i32
    return %c0_i32, %c0_i32_0 : i32, i32
  }
  func.func @transform_4(%arg0: i32) -> (i32, i32) {
    %c0_i32 = arith.constant 0 : i32
    %c0_i32_0 = arith.constant 0 : i32
    return %arg0, %c0_i32 : i32, i32
  }
}

</mosaic_0001>

<bundles_post_ra>
// kernel: tpu_custom_call.1
= control target key start
LH: loop header
LB: loop body
LE: loop exit
PB: predicated region body
PF: predicated region fallthrough
CT: control target
= control target key end

     0   :  { %9 = vsyncpa [#allocation3], 0  ;;  %s268_s0 = inlined_call_operand.hbm [shape: f32[16,128], index: 0, kind: input, shape index: {}]   ;;  %s269_s1 = inlined_call_operand.hbm [shape: f32[16,128], index: 1, kind: input, shape index: {}]   ;;  %s270_s2 = inlined_call_operand.vmem [shape: f32[1,128], index: 2, kind: input, shape index: {}]   ;;  %s271_s3 = inlined_call_operand.vmem [shape: f32[1,128], index: 3, kind: input, shape index: {}]   ;;  %s272_s4 = inlined_call_operand.hbm [shape: f32[16,128], index: 4, kind: output, shape index: {}]  }
   0x1   :  { %10 = vsyncpa [#allocation6], 0 }
   0x2   :  { %11 = vsyncpa [#allocation4], 0  ;;  %s214_s15 = smov [#allocation2]  }
   0x3   :  { %s17_s16 = sshll.u32 %s214_s15, 4  ;;  %s18_s16 = int_to_ptr.vmem [resolvable:$true] %s17_s16 }
   0x4   :  { %s156_s17 = scalar_lea.vmem %s18_s16, 256  ;;  %p161_p1 = scmp.lt.s32.totalorder %s18_s16, %s18_s16 }
   0x5   :  { %p157_p0 = scmp.ne.s32.totalorder %s18_s16, %s156_s17  ;;  %p162_p2 = scmp.lt.s32.totalorder %s156_s17, %s156_s17 }
   0x7   :  { %p163_p3 = por %p162_p2, %p161_p1 }
   0x9   :  { %p164_p4 = pnand %p163_p3, %p157_p0 }
   0xb   :  { %167 = shalt.err (!%p164_p4)
}
   0xc   :  { %s215_s18 = smov 128   ;;  %s216_s19 = smov 8  }
   0xd   :  { %23 = dma.hbm_to_vmem [thread:$0]  %s268_s0, 256, %s18_s16, [#allocation3], %s215_s18, %s215_s18, %s216_s19  }
   0xe   :  { %s217_s22 = smov [#allocation5]  }
   0xf   :  { %s29_s23 = sshll.u32 %s217_s22, 4  ;;  %s30_s23 = int_to_ptr.vmem [resolvable:$true] %s29_s23 }
  0x10   :  { %s176_s24 = scalar_lea.vmem %s30_s23, 256  ;;  %p181_p6 = scmp.lt.s32.totalorder %s30_s23, %s30_s23 }
  0x11   :  { %p177_p5 = scmp.ne.s32.totalorder %s30_s23, %s176_s24  ;;  %p182_p7 = scmp.lt.s32.totalorder %s176_s24, %s176_s24 }
  0x13   :  { %p183_p8 = por %p182_p7, %p181_p6 }
  0x15   :  { %p184_p9 = pnand %p183_p8, %p177_p5 }
  0x17   :  { %187 = shalt.err (!%p184_p9)
}
  0x18   :  { %35 = dma.hbm_to_vmem [thread:$0]  %s269_s1, 256, %s30_s23, [#allocation6], %s215_s18, %s215_s18, %s216_s19  }
  0x19   :  { %208 = dma.done.wait [#allocation3], 256  }
  0x1a   :  { %209 = vsyncadd [#allocation3], 4294967040 }
  0x1b   :  { %210 = dma.done.wait [#allocation6], 256  }
  0x1c   :  { %211 = vsyncadd [#allocation6], 4294967040  ;;  %v46_v0 = vld [vmem:[#allocation2] sm:$0xff]  ;;  %v48_v1 = vld [vmem:[#allocation5] sm:$0xff]  ;;  %v60_v6 = vlaneseq  ;;  %s218_s29 = smov [#allocation7]  }
  0x1d   :  { %v47_v2 = vld [vmem:[#allocation2 + $0x8] sm:$0xff]  ;;  %v50_v3 = vadd.f32 %v48_v1, %v46_v0  ;;  %v49_v4 = vld [vmem:[#allocation5 + $0x8] sm:$0xff]  ;;  %v133_v35 = vld [vmem:[%s270_s2] ss:$0 sm:$0xff]  ;;  %s120_s30 = sshll.u32 %s218_s29, 4  ;;  %s121_s30 = int_to_ptr.vmem [resolvable:$true] %s120_s30 }
  0x1e   :  { %v51_v5 = vadd.f32 %v49_v4, %v47_v2  ;;  %v61_v7 = vand.u32 127, %v60_v6  ;;  %v134_v37 = vld [vmem:[%s271_s3] ss:$0 sm:$0xff]  ;;  %s188_s5 = scalar_lea.vmem %s121_s30, 256  ;;  %p193_p11 = scmp.lt.s32.totalorder %s121_s30, %s121_s30 }
  0x1f   :  { %52 = vadd.xlane.f32.xlu0 %v50_v3  ;;  %p189_p10 = scmp.ne.s32.totalorder %s121_s30, %s188_s5  ;;  %p194_p12 = scmp.lt.s32.totalorder %s188_s5, %s188_s5 }
  0x20   :  { %vm62_vm0 = vcmp.lt.s32.totalorder %v61_v7, 32 }
  0x21   :  { %p195_p13 = por %p194_p12, %p193_p11 }
  0x23   :  { %54 = vadd.xlane.f32.xlu0 %v51_v5  ;;  %p196_p0 = pnand %p195_p13, %p189_p10 }
  0xa8   :  { %v53_v8 = vpop.xlane.xlu0 %52 }
  0xa9   :  { %v56_v9 = vmul.f32 0.03125, %v53_v8 }
  0xab   :  { %v58_v10 = vsub.f32 %v50_v3, %v56_v9 }
  0xac   :  { %v55_v11 = vpop.xlane.xlu0 %54 }
  0xad   :  { %v57_v12 = vmul.f32 0.03125, %v55_v11  ;;  %v63_v13 = vsel %vm62_vm0, %v58_v10, 0.0 }
  0xae   :  { %v65_v14 = vmul.f32 %v63_v13, %v63_v13 }
  0xaf   :  { %v59_v15 = vsub.f32 %v51_v5, %v57_v12 }
  0xb0   :  { %67 = vadd.xlane.f32.xlu1 %v65_v14 }
  0xb1   :  { %v64_v16 = vsel %vm62_vm0, %v59_v15, 0.0 }
  0xb2   :  { %v66_v17 = vmul.f32 %v64_v16, %v64_v16 }
  0xb4   :  { %69 = vadd.xlane.f32.xlu1 %v66_v17 }
 0x139   :  { %v68_v18 = vpop.xlane.xlu1 %67 }
 0x13a   :  { %v71_v19 = vmul.f32 0.03125, %v68_v18 }
 0x13c   :  { %v73_v20 = vadd.f32 1e-12, %v71_v19 }
 0x13d   :  { %v70_v21 = vpop.xlane.xlu1 %69 }
 0x13e   :  { %140 = vrsqrt.f32 %v73_v20  ;;  %v72_v22 = vmul.f32 0.03125, %v70_v21  ;;  %vm77_vm1 = vcmp.eq.f32.partialorder %v73_v20, inf  ;;  %v80_v26 = vand.u32 2147483648, %v73_v20 }
 0x13f   :  { %vm79_vm2 = vcmp.eq.f32.partialorder %v73_v20, 0.0 }
 0x140   :  { %v74_v23 = vadd.f32 1e-12, %v72_v22 }
 0x142   :  { %142 = vrsqrt.f32 %v74_v23  ;;  %vm84_vm3 = vcmp.eq.f32.partialorder %v74_v23, inf  ;;  %v87_v31 = vand.u32 2147483648, %v74_v23  ;;  %vm86_vm4 = vcmp.eq.f32.partialorder %v74_v23, 0.0 }
 0x14b   :  { %v141_v24 = vpop.eup %140 }
 0x14c   :  { %v76_v25 = vmul.f32 %v141_v24, %v73_v20 }
 0x14e   :  { %v78_v27 = vsel %vm77_vm1, %v73_v20, %v76_v25 }
 0x14f   :  { %v81_v28 = vsel %vm79_vm2, %v80_v26, %v78_v27  ;;  %v143_v29 = vpop.eup %142 }
 0x150   :  { %144 = vrcp.f32 %v81_v28  ;;  %v83_v30 = vmul.f32 %v143_v29, %v74_v23 }
 0x152   :  { %v85_v32 = vsel %vm84_vm3, %v74_v23, %v83_v30 }
 0x153   :  { %v88_v33 = vsel %vm86_vm4, %v87_v31, %v85_v32 }
 0x154   :  { %146 = vrcp.f32 %v88_v33 }
 0x15d   :  { %v145_v34 = vpop.eup %144 }
 0x15e   :  { %v93_v36 = vmul.f32 %v145_v34, %v63_v13 }
 0x160   :  { %v102_v38 = vmul.f32 %v133_v35, %v93_v36 }
 0x161   :  { %v147_v39 = vpop.eup %146 }
 0x162   :  { %v111_v40 = vadd.f32 %v134_v37, %v102_v38  ;;  %v94_v41 = vmul.f32 %v147_v39, %v64_v16 }
 0x164   :  { %113 = vst [vmem:[#allocation7] sm:$0xff] %v111_v40  ;;  %v103_v42 = vmul.f32 %v133_v35, %v94_v41 }
 0x166   :  { %v112_v43 = vadd.f32 %v134_v37, %v103_v42 }
 0x168   :  { %114 = vst [vmem:[#allocation7 + $0x8] sm:$0xff] %v112_v43 }
 0x169   :  { %199 = shalt.err (!%p196_p0)
}
 0x16a   :  { %126 = dma.vmem_to_hbm [thread:$0]  %s121_s30, 256, %s272_s4, [#allocation4], %s215_s18, %s215_s18, %s216_s19  }
 0x16b   :  { %212 = dma.done.wait [#allocation4], 256  }
 0x16c   :  { %213 = vsyncadd [#allocation4], 4294967040 }
 0x16d   :  { %130 = vsyncpa [#allocation3], 1 }
 0x16e   :  { %131 = vsyncpa [#allocation6], 1 }
 0x16f   :  { %132 = vsyncpa [#allocation4], 1 }

</bundles_post_ra>
